<compile_context>
chip_gen: v7x
topology: tpu7x:2x2x1
jax: 0.10.0
libtpu: 0.0.40
codegen_flags: <defaults>
</compile_context>

<pallas_src>
import functools

import jax
import jax.numpy as jnp
from jax.experimental import pallas as pl
from jax.experimental.pallas import tpu as pltpu

HIDDEN = 128
LOG_2PI = float(jnp.log(2.0 * jnp.pi))
ACTION_SCALE = 10.0


def _softplus(x):
    # Numerically stable softplus, matches F.softplus semantics.
    return jnp.maximum(x, 0.0) + jnp.log1p(jnp.exp(-jnp.abs(x)))


def policy_kernel(xe_ref, p1_ref, ph_ref, out_ref, *, in_dim, out_dim):
    xe = xe_ref[...]                       # (TB, in_dim + out_dim) = [x | eps]
    x = xe[:, :in_dim]
    eps = xe[:, in_dim:]

    # fc1 + ReLU (bias row packed under the weight rows)
    p1 = p1_ref[...]                       # (in_dim + 1, HIDDEN)
    w1 = p1[:in_dim, :]
    b1 = p1[in_dim:, :]                    # (1, HIDDEN)
    h = jnp.dot(x, w1, preferred_element_type=jnp.float32) + b1
    h = jnp.maximum(h, 0.0)                # (TB, HIDDEN)

    # Fused mu/std heads: one matmul, columns [mu | pre_std]
    ph = ph_ref[...]                       # (HIDDEN + 1, 2*out_dim)
    wh = ph[:HIDDEN, :]
    bh = ph[HIDDEN:, :]                    # (1, 2*out_dim)
    heads = jnp.dot(h, wh, preferred_element_type=jnp.float32) + bh
    mu = heads[:, :out_dim]
    pre_std = heads[:, out_dim:]

    std = _softplus(pre_std) + 1e-6        # (TB, out_dim)

    # Reparameterized sample + tanh squash + log-prob correction.
    action = mu + std * eps
    t = jnp.tanh(action)
    # Normal(mu, std).log_prob(action) - log(1 - tanh(a)^2 + 1e-7),
    # with the two logs merged into one transcendental.
    real_log_prob = (-0.5 * eps * eps - 0.5 * LOG_2PI
                     - jnp.log(std * (1.0 - t * t + 1e-7)))

    # Single packed store: [10*tanh(action) | real_log_prob]
    out_ref[...] = jnp.concatenate([ACTION_SCALE * t, real_log_prob], axis=1)


def _policy_pallas(xe, p1, ph, *, in_dim, out_dim, block_b):
    B = xe.shape[0]
    grid = (pl.cdiv(B, block_b),)
    kernel = functools.partial(policy_kernel, in_dim=in_dim, out_dim=out_dim)
    return pl.pallas_call(
        kernel,
        out_shape=jax.ShapeDtypeStruct((B, 2 * out_dim), jnp.float32),
        grid_spec=pltpu.PrefetchScalarGridSpec(
            num_scalar_prefetch=0,
            grid=grid,
            in_specs=[
                pl.BlockSpec((block_b, in_dim + out_dim), lambda i: (i, 0)),
                pl.BlockSpec((in_dim + 1, HIDDEN), lambda i: (0, 0)),
                pl.BlockSpec((HIDDEN + 1, 2 * out_dim), lambda i: (0, 0)),
            ],
            out_specs=pl.BlockSpec((block_b, 2 * out_dim), lambda i: (i, 0)),
        ),
        compiler_params=pltpu.CompilerParams(
            dimension_semantics=("parallel",)),
    )(xe, p1, ph)


@functools.partial(jax.jit, static_argnames=("block_b",))
def policy_apply(x, eps, w1, b1, wmu, bmu, wstd, bstd, *, block_b=None):
    """Packs operands, runs the kernel, and splits the packed output."""
    B, in_dim = x.shape
    out_dim = wmu.shape[1]
    if block_b is None:
        block_b = B                                   # single grid step at small B

    xe = jnp.concatenate([x, eps], axis=1)            # (B, in_dim + out_dim)
    p1 = jnp.concatenate([w1, b1], axis=0)            # (in_dim + 1, HIDDEN)
    ph = jnp.concatenate(
        [jnp.concatenate([wmu, wstd], axis=1),
         jnp.concatenate([bmu, bstd], axis=1)], axis=0)  # (HIDDEN + 1, 2*out_dim)

    out = _policy_pallas(xe, p1, ph, in_dim=in_dim, out_dim=out_dim,
                         block_b=block_b)
    return out[:, :out_dim], out[:, out_dim:]


def init_params(key, in_dim, out_dim=1):
    """Deterministic synthetic parameters (PyTorch Linear-style uniform init).

    Weights are stored transposed vs. PyTorch so the kernel computes x @ W.
    """
    ks = jax.random.split(key, 6)

    def uniform(k, shape, fan_in):
        bound = 1.0 / jnp.sqrt(fan_in)
        return jax.random.uniform(k, shape, jnp.float32, -bound, bound)

    w1 = uniform(ks[0], (in_dim, HIDDEN), in_dim)
    b1 = uniform(ks[1], (1, HIDDEN), in_dim)
    wmu = uniform(ks[2], (HIDDEN, out_dim), HIDDEN)
    bmu = uniform(ks[3], (1, out_dim), HIDDEN)
    wstd = uniform(ks[4], (HIDDEN, out_dim), HIDDEN)
    bstd = uniform(ks[5], (1, out_dim), HIDDEN)
    return w1, b1, wmu, bmu, wstd, bstd


def reference_forward(x, eps, w1, b1, wmu, bmu, wstd, bstd):
    h = jax.nn.relu(x @ w1 + b1)
    mu = h @ wmu + bmu
    std = jax.nn.softplus(h @ wstd + bstd) + 1e-6
    action = mu + std * eps
    log_prob = -0.5 * eps * eps - jnp.log(std) - 0.5 * LOG_2PI
    t = jnp.tanh(action)
    return ACTION_SCALE * t, log_prob - jnp.log(1.0 - t * t + 1e-7)


if __name__ == "__main__":
    key = jax.random.PRNGKey(0)
    k_param, k_x, k_eps = jax.random.split(key, 3)

    B, in_dim, out_dim = 8, 4, 1
    params = init_params(k_param, in_dim, out_dim)
    x = jax.random.normal(k_x, (B, in_dim), jnp.float32)
    # Reparameterization noise (the stochastic part of dist.rsample()).
    # TODO(synk): could be generated in-kernel via pltpu.prng_* if host-RNG
    # parity were not required.
    eps = jax.random.normal(k_eps, (B, out_dim), jnp.float32)

    act, logp = policy_apply(x, eps, *params)
    jax.block_until_ready((act, logp))

    ref_act, ref_logp = reference_forward(x, eps, *params)
    assert jnp.allclose(act, ref_act, atol=1e-5, rtol=1e-5)
    assert jnp.allclose(logp, ref_logp, atol=1e-5, rtol=1e-5)

    print("KERNEL_OK")
</pallas_src>

<mosaic_0001>
module attributes {stable_mosaic.version = 11 : i64} {
  func.func @policy_kernel(%arg0: i32, %arg1: memref<8x5xf32, #tpu.memory_space<vmem>>, %arg2: memref<5x128xf32, #tpu.memory_space<vmem>>, %arg3: memref<129x2xf32, #tpu.memory_space<vmem>>, %arg4: memref<8x2xf32, #tpu.memory_space<vmem>>) attributes {dimension_semantics = [#tpu.dimension_semantics<parallel>], iteration_bounds = array<i64: 1>, scalar_prefetch = 0 : i64, scratch_operands = 0 : i64, tpu.core_type = #tpu.core_type<tc>, window_params = [{transform_indices = @transform_0, window_bounds = array<i64: 8, 5>}, {pipeline_mode = #tpu.pipeline_mode<synchronous>, transform_indices = @transform_1, window_bounds = array<i64: 5, 128>}, {pipeline_mode = #tpu.pipeline_mode<synchronous>, transform_indices = @transform_2, window_bounds = array<i64: 129, 2>}, {transform_indices = @transform_3, window_bounds = array<i64: 8, 2>}]} {
    %c0 = arith.constant 0 : index
    %c0_0 = arith.constant 0 : index
    %0 = vector.load %arg1[%c0, %c0_0] : memref<8x5xf32, #tpu.memory_space<vmem>>, vector<8x5xf32>
    %1 = vector.extract_strided_slice %0 {offsets = [0, 0], sizes = [8, 4], strides = [1, 1]} : vector<8x5xf32> to vector<8x4xf32>
    %2 = vector.extract_strided_slice %0 {offsets = [0, 4], sizes = [8, 1], strides = [1, 1]} : vector<8x5xf32> to vector<8x1xf32>
    %c0_1 = arith.constant 0 : index
    %c0_2 = arith.constant 0 : index
    %3 = vector.load %arg2[%c0_1, %c0_2] : memref<5x128xf32, #tpu.memory_space<vmem>>, vector<5x128xf32>
    %4 = vector.extract_strided_slice %3 {offsets = [0, 0], sizes = [4, 128], strides = [1, 1]} : vector<5x128xf32> to vector<4x128xf32>
    %5 = vector.extract_strided_slice %3 {offsets = [4, 0], sizes = [1, 128], strides = [1, 1]} : vector<5x128xf32> to vector<1x128xf32>
    %cst = arith.constant dense<0.000000e+00> : vector<8x128xf32>
    %6 = tpu.matmul %1, %4, %cst {dimension_numbers = #tpu.dot_dimension_numbers<[1], [0], [0], [1], [0, 0, 1, 1], [], []>} : vector<8x4xf32>, vector<4x128xf32>, vector<8x128xf32> -> vector<8x128xf32>
    %7 = vector.broadcast %5 : vector<1x128xf32> to vector<8x128xf32>
    %8 = arith.addf %6, %7 : vector<8x128xf32>
    %cst_3 = arith.constant 0.000000e+00 : f32
    %9 = vector.broadcast %cst_3 : f32 to vector<8x128xf32>
    %10 = arith.maximumf %8, %9 : vector<8x128xf32>
    %c0_4 = arith.constant 0 : index
    %c0_5 = arith.constant 0 : index
    %11 = vector.load %arg3[%c0_4, %c0_5] : memref<129x2xf32, #tpu.memory_space<vmem>>, vector<129x2xf32>
    %12 = vector.extract_strided_slice %11 {offsets = [0, 0], sizes = [128, 2], strides = [1, 1]} : vector<129x2xf32> to vector<128x2xf32>
    %13 = vector.extract_strided_slice %11 {offsets = [128, 0], sizes = [1, 2], strides = [1, 1]} : vector<129x2xf32> to vector<1x2xf32>
    %cst_6 = arith.constant dense<0.000000e+00> : vector<8x2xf32>
    %14 = tpu.matmul %10, %12, %cst_6 {dimension_numbers = #tpu.dot_dimension_numbers<[1], [0], [0], [1], [0, 0, 1, 1], [], []>} : vector<8x128xf32>, vector<128x2xf32>, vector<8x2xf32> -> vector<8x2xf32>
    %15 = vector.broadcast %13 : vector<1x2xf32> to vector<8x2xf32>
    %16 = arith.addf %14, %15 : vector<8x2xf32>
    %17 = vector.extract_strided_slice %16 {offsets = [0, 0], sizes = [8, 1], strides = [1, 1]} : vector<8x2xf32> to vector<8x1xf32>
    %18 = vector.extract_strided_slice %16 {offsets = [0, 1], sizes = [8, 1], strides = [1, 1]} : vector<8x2xf32> to vector<8x1xf32>
    %cst_7 = arith.constant 0.000000e+00 : f32
    %19 = vector.broadcast %cst_7 : f32 to vector<8x1xf32>
    %20 = arith.maximumf %18, %19 : vector<8x1xf32>
    %21 = math.absf %18 : vector<8x1xf32>
    %cst_8 = arith.constant 0.000000e+00 : f32
    %22 = vector.broadcast %cst_8 : f32 to vector<8x1xf32>
    %23 = arith.subf %22, %21 : vector<8x1xf32>
    %24 = math.exp %23 : vector<8x1xf32>
    %25 = math.log1p %24 : vector<8x1xf32>
    %26 = arith.addf %20, %25 : vector<8x1xf32>
    %cst_9 = arith.constant 9.99999997E-7 : f32
    %27 = vector.broadcast %cst_9 : f32 to vector<8x1xf32>
    %28 = arith.addf %26, %27 : vector<8x1xf32>
    %29 = arith.mulf %28, %2 : vector<8x1xf32>
    %30 = arith.addf %17, %29 : vector<8x1xf32>
    %31 = math.tanh %30 : vector<8x1xf32>
    %cst_10 = arith.constant -5.000000e-01 : f32
    %32 = vector.broadcast %cst_10 : f32 to vector<8x1xf32>
    %33 = arith.mulf %32, %2 : vector<8x1xf32>
    %34 = arith.mulf %33, %2 : vector<8x1xf32>
    %cst_11 = arith.constant 0.918938517 : f32
    %35 = vector.broadcast %cst_11 : f32 to vector<8x1xf32>
    %36 = arith.subf %34, %35 : vector<8x1xf32>
    %37 = arith.mulf %31, %31 : vector<8x1xf32>
    %cst_12 = arith.constant 1.000000e+00 : f32
    %38 = vector.broadcast %cst_12 : f32 to vector<8x1xf32>
    %39 = arith.subf %38, %37 : vector<8x1xf32>
    %cst_13 = arith.constant 1.000000e-07 : f32
    %40 = vector.broadcast %cst_13 : f32 to vector<8x1xf32>
    %41 = arith.addf %39, %40 : vector<8x1xf32>
    %42 = arith.mulf %28, %41 : vector<8x1xf32>
    %43 = math.log %42 : vector<8x1xf32>
    %44 = arith.subf %36, %43 : vector<8x1xf32>
    %cst_14 = arith.constant 1.000000e+01 : f32
    %45 = vector.broadcast %cst_14 : f32 to vector<8x1xf32>
    %46 = arith.mulf %45, %31 : vector<8x1xf32>
    %47 = tpu.concatenate %46, %44 in 1 : vector<8x1xf32>, vector<8x1xf32> -> vector<8x2xf32>
    %c0_15 = arith.constant 0 : index
    %c0_16 = arith.constant 0 : index
    %48 = vector.load %arg4[%c0_15, %c0_16] : memref<8x2xf32, #tpu.memory_space<vmem>>, vector<8x2xf32>
    tpu.vector_store %arg4[%c0_15, %c0_16], %47 {strides = array<i32>} : memref<8x2xf32, #tpu.memory_space<vmem>>, vector<8x2xf32>,
    return
  }
  func.func @transform_0(%arg0: i32) -> (i32, i32) {
    %c0_i32 = arith.constant 0 : i32
    %c0_i32_0 = arith.constant 0 : i32
    return %arg0, %c0_i32 : i32, i32
  }
  func.func @transform_1(%arg0: i32) -> (i32, i32) {
    %c0_i32 = arith.constant 0 : i32
    %c0_i32_0 = arith.constant 0 : i32
    %c0_i32_1 = arith.constant 0 : i32
    return %c0_i32, %c0_i32_0 : i32, i32
  }
  func.func @transform_2(%arg0: i32) -> (i32, i32) {
    %c0_i32 = arith.constant 0 : i32
    %c0_i32_0 = arith.constant 0 : i32
    %c0_i32_1 = arith.constant 0 : i32
    return %c0_i32, %c0_i32_0 : i32, i32
  }
  func.func @transform_3(%arg0: i32) -> (i32, i32) {
    %c0_i32 = arith.constant 0 : i32
    %c0_i32_0 = arith.constant 0 : i32
    return %arg0, %c0_i32 : i32, i32
  }
}

</mosaic_0001>

<bundles_post_ra>
// kernel: policy_apply.1
= control target key start
LH: loop header
LB: loop body
LE: loop exit
PB: predicated region body
PF: predicated region fallthrough
CT: control target
= control target key end

     0   :  { %vm24_vm0 = vcmask 1043456   ;;  %vm20_vm1 = vcmask 31744   ;;  %v349_v0 = vmov 0.0   ;;  %vm350_vm2 = vmmov 0   ;;  %s352_s19 = smov 125   ;;  %s354_s21 = smov 1   ;;  %s444_s1 = inlined_call_operand.vmem [shape: f32[5,128], index: 1, kind: input, shape index: {}]   ;;  %s445_s0 = inlined_call_operand.vmem [shape: f32[8,5], index: 0, kind: input, shape index: {}]   ;;  %s446_s2 = inlined_call_operand.vmem [shape: f32[129,2], index: 2, kind: input, shape index: {}]   ;;  %s447_s3 = inlined_call_operand.vmem [shape: f32[8,2], index: 3, kind: output, shape index: {}]  }
   0x1   :  { %270 = vmatprep.subr.mxu0 %v349_v0  ;;  %v15_v1 = vld [vmem:[%s444_s1] sm:$0x1f]  ;;  %272 = vmatprep.mubr.msk.f32.mxu0 %vm350_vm2, %v349_v0  ;;  %v351_v4 = vmov 0.0|0.0   ;;  %v100_v5 = vld [vmem:[%s446_s2 + $0x8] sm:$0xff]  ;;  %v101_v6 = vld [vmem:[%s446_s2 + $0x10] sm:$0xff]  ;;  %v16_v28 = vlaneseq  ;;  %s355_s22 = smov 3  }
   0x2   :  { %v382_v2 = vld [vmem:[%s445_s0] sm:$0xff]  ;;  %271 = vmatpush3.msk.msra.mxu0 %vm24_vm0, %v15_v1  ;;  %310 = vmatprep.subr.bf16.mxu1 %v351_v4  ;;  %v102_v7 = vld [vmem:[%s446_s2 + $0x18] sm:$0xff]  ;;  %v104_v11 = vld [vmem:[%s446_s2 + $0x28] sm:$0xff]  ;;  %vm239_vm4 = vcmask 7168   ;;  %vm241_vm5 = vcmask 15360  }
   0x3   :  { %v99_v3 = vld [vmem:[%s446_s2] sm:$0xff]  ;;  %273 = vmatmul.mubr.msk.f32.vlgmr.msra.gmra.mrb[0].mxu0 %vm20_vm1, %v382_v2  ;;  %307 = vmatprep.mubr.msk.f32.mxu1 %vm350_vm2, %v349_v0  ;;  %v314_v9 = vpack.c.bf16 %v102_v7, %v101_v6  ;;  %v105_v13 = vld [vmem:[%s446_s2 + $0x30] sm:$0xff]  ;;  %v106_v14 = vld [vmem:[%s446_s2 + $0x38] sm:$0xff]  ;;  %v17_v29 = vshrl.u32 %v16_v28, 7 }
   0x4   :  { %v311_v8 = vpack.c.bf16 %v100_v5, %v99_v3  ;;  %v103_v10 = vld [vmem:[%s446_s2 + $0x20] sm:$0xff]  ;;  %v320_v15 = vpack.c.bf16 %v106_v14, %v105_v13  ;;  %v108_v17 = vld [vmem:[%s446_s2 + $0x48] sm:$0xff]  ;;  %v109_v19 = vld [vmem:[%s446_s2 + $0x50] sm:$0xff]  ;;  %206 = vrot.lane.b32.xlu0 %v382_v2, %s352_s19 }
   0x5   :  { %v317_v12 = vpack.c.bf16 %v104_v11, %v103_v10  ;;  %v107_v16 = vld [vmem:[%s446_s2 + $0x40] sm:$0xff]  ;;  %v110_v20 = vld [vmem:[%s446_s2 + $0x58] sm:$0xff]  ;;  %v112_v23 = vld [vmem:[%s446_s2 + $0x68] sm:$0xff]  ;;  %v18_v30 = vsub.s32 4, %v17_v29 }
   0x6   :  { %312 = vmatpush3.bf16.msra.mxu1 %v311_v8  ;;  %v323_v18 = vpack.c.bf16 %v108_v17, %v107_v16  ;;  %v326_v21 = vpack.c.bf16 %v110_v20, %v109_v19  ;;  %v111_v22 = vld [vmem:[%s446_s2 + $0x60] sm:$0xff]  ;;  %v113_v25 = vld [vmem:[%s446_s2 + $0x70] sm:$0xff]  ;;  %v114_v26 = vld [vmem:[%s446_s2 + $0x78] sm:$0xff] }
   0x7   :  { %313 = vmatprep.subr.bf16.mxu1 %v351_v4  ;;  %v329_v24 = vpack.c.bf16 %v112_v23, %v111_v22  ;;  %v332_v27 = vpack.c.bf16 %v114_v26, %v113_v25  ;;  %v19_v31 = vrot.slane %v15_v1, %v18_v30  ;;  %v249_v36 = vld [vmem:[%s446_s2 + $0x80] ss:$0 sm:$0xff]  ;;  %s353_s2 = smov 127  }
   0xa   :  { %315 = vmatpush3.bf16.msra.mxu1 %v314_v9 }
   0xb   :  { %316 = vmatprep.subr.bf16.mxu1 %v351_v4 }
   0xe   :  { %318 = vmatpush3.bf16.msra.mxu1 %v317_v12 }
   0xf   :  { %319 = vmatprep.subr.bf16.mxu1 %v351_v4 }
  0x12   :  { %321 = vmatpush3.bf16.msra.mxu1 %v320_v15 }
  0x13   :  { %322 = vmatprep.subr.bf16.mxu1 %v351_v4 }
  0x16   :  { %324 = vmatpush3.bf16.msra.mxu1 %v323_v18 }
  0x17   :  { %325 = vmatprep.subr.bf16.mxu1 %v351_v4 }
  0x1a   :  { %327 = vmatpush3.bf16.msra.mxu1 %v326_v21 }
  0x1b   :  { %328 = vmatprep.subr.bf16.mxu1 %v351_v4 }
  0x1e   :  { %330 = vmatpush3.bf16.msra.mxu1 %v329_v24 }
  0x1f   :  { %331 = vmatprep.subr.bf16.mxu1 %v351_v4  ;;  %v216_v4 = vmul.f32 -0.5, %v382_v2 }
  0x21   :  { %v217_v5 = vmul.f32 %v216_v4, %v382_v2 }
  0x22   :  { %333 = vmatpush3.bf16.msra.mxu1 %v332_v27 }
  0x23   :  { %v250_v6 = vadd.f32 -0.9189385, %v217_v5 }
  0x76   :  { %v207_v54 = vpop.permute.xlu0 %206 }
  0xd6   :  { %v94_v32 = vpop.f32.mrb[0].mxu0 }
  0xd7   :  { %v95_v33 = vadd.f32 %v94_v32, %v19_v31  ;;  %v274_v34 = vpop.f32.mrb[1].mxu0 }
  0xd9   :  { %v98_v35 = vmax.f32 %v95_v33, 0.0 }
  0xdb   :  { %308 = vmatmul.mubr.f32.vlgmr.msra.gmra.mrb[0].mxu1 %v98_v35 }
 0x1ae   :  { %v186_v37 = vpop.f32.mrb[0].mxu1 }
 0x1af   :  { %v187_v38 = vadd.f32 %v249_v36, %v186_v37  ;;  %v309_v39 = vpop.f32.mrb[1].mxu1 }
 0x1b1   :  { %v191_v40 = vand.u32 2147483647, %v187_v38  ;;  %v190_v51 = vmax.f32 %v187_v38, 0.0 }
 0x1b3   :  { %v192_v41 = vsub.f32 0.0, %v191_v40 }
 0x1b5   :  { %v193_v42 = vmul.f32 1.442695, %v192_v41 }
 0x1b7   :  { %341 = vpow2.f32 %v193_v42 }
 0x1c1   :  { %v342_v43 = vpop.eup %341 }
 0x1c2   :  { %v195_v44 = vadd.f32 1.0, %v342_v43  ;;  %v198_v45 = vmul.f32 -0.5, %v342_v43  ;;  %v201_v47 = vand.u32 2147483647, %v342_v43 }
 0x1c4   :  { %343 = vlog2.f32 %v195_v44  ;;  %v199_v46 = vadd.f32 1.0, %v198_v45  ;;  %vm202_vm3 = vcmp.lt.f32.partialorder %v201_v47, 0.0004427343 }
 0x1c6   :  { %v200_v50 = vmul.f32 %v342_v43, %v199_v46 }
 0x1ce   :  { %v344_v48 = vpop.eup %343 }
 0x1cf   :  { %v197_v49 = vmul.f32 0.6931472, %v344_v48 }
 0x1d1   :  { %v203_v52 = vsel %vm202_vm3, %v200_v50, %v197_v49 }
 0x1d2   :  { %v204_v53 = vadd.f32 %v203_v52, %v190_v51 }
 0x1d4   :  { %v205_v55 = vadd.f32 1e-06, %v204_v53 }
 0x1d6   :  { %v209_v56 = vmul.f32 %v207_v54, %v205_v55 }
 0x1d8   :  { %211 = vrot.lane.b32.xlu0 %v209_v56, %s353_s2 }
 0x24a   :  { %v212_v57 = vpop.permute.xlu0 %211 }
 0x24b   :  { %v214_v58 = vadd.f32 %v212_v57, %v187_v38 }
 0x24d   :  { %345 = vtanh.f32 %v214_v58 }
 0x257   :  { %v346_v59 = vpop.eup %345 }
 0x258   :  { %v219_v60 = vmul.f32 %v346_v59, %v346_v59  ;;  %v234_v9 = vmul.f32 10.0, %v346_v59 }
 0x25a   :  { %v220_v61 = vsub.f32 1.0, %v219_v60 }
 0x25c   :  { %v221_v62 = vadd.f32 1e-07, %v220_v61 }
 0x25e   :  { %223 = vrot.lane.b32.xlu1 %v221_v62, %s354_s21 }
 0x2d0   :  { %v224_v63 = vpop.permute.xlu1 %223 }
 0x2d1   :  { %v226_v0 = vmul.f32 %v224_v63, %v205_v55 }
 0x2d3   :  { %347 = vlog2.f32 %v226_v0 }
 0x2dd   :  { %v348_v1 = vpop.eup %347 }
 0x2de   :  { %v228_v3 = vmul.f32 0.6931472, %v348_v1 }
 0x2e0   :  { %230 = vrot.lane.b32.xlu1 %v228_v3, %s355_s22 }
 0x352   :  { %v231_v7 = vpop.permute.xlu1 %230 }
 0x353   :  { %v233_v8 = vsub.f32 %v250_v6, %v231_v7 }
 0x355   :  { %236 = vrot.lane.b32.xlu0 %v233_v8, %s352_s19 }
 0x3c7   :  { %v237_v10 = vpop.permute.xlu0 %236 }
 0x3c8   :  { %v240_v11 = vsel %vm239_vm4, %v234_v9, %v237_v10 }
 0x3c9   :  { %242 = vst.msk [vmem:[%s447_s3] sm:$0xff] %vm241_vm5, %v240_v11 }

</bundles_post_ra>
